<compile_context>
chip_gen: v5e
topology: v5e:2x2
jax: 0.10.0
libtpu: 0.0.40
codegen_flags: <defaults>
</compile_context>

<pallas_src>
import functools

import jax
import jax.numpy as jnp
from jax.experimental import pallas as pl
from jax.experimental.pallas import tpu as pltpu

_IN = 5
_OUT = 5
_LANE = 128
# Parameter slab layout (rows, cols) inside a (32, 16) f32 block:
#   W1: [0:10, 0:5]   b1: [0:10, 5:6]
#   W2: [10:15, 0:10] b2: [10:15, 10:11]
#   W3: [15:20, 0:5]  b3: [15:20, 5:6]
#   W4: [20:25, 0:5]  b4: [20:25, 5:6]
_SLAB_SHAPE = (32, 16)


def _dense_relu_vpu(x, w, b):
    """relu(w @ x + b) as unrolled broadcast-FMAs on the VPU.

    x: (f_in, TB)    batch on the 128-wide lane axis (dense vectors)
    w: (f_out, f_in) PyTorch Linear weight layout
    b: (f_out, 1)
    """
    f_in = w.shape[1]
    acc = w[:, 0:1] * x[0:1, :] + b              # (f_out, TB)
    for i in range(1, f_in):                     # static unroll; f_in in {5, 10}
        acc = acc + w[:, i:i + 1] * x[i:i + 1, :]
    return jnp.maximum(acc, 0.0)


def _mlp_kernel(x_ref, p_ref, o_ref):
    p = p_ref[...]                               # (32, 16) resident param slab
    x = x_ref[...]                               # (5, TB)

    h = _dense_relu_vpu(x, p[0:10, 0:5],   p[0:10, 5:6])      # (10, TB)
    h = _dense_relu_vpu(h, p[10:15, 0:10], p[10:15, 10:11])   # (5, TB)
    h = _dense_relu_vpu(h, p[15:20, 0:5],  p[15:20, 5:6])     # (5, TB)
    h = _dense_relu_vpu(h, p[20:25, 0:5],  p[20:25, 5:6])     # (5, TB)

    # Softmax over the feature axis (axis 0 here == PyTorch dim=1 of (B, 5)).
    m = jnp.max(h, axis=0, keepdims=True)        # (1, TB)
    e = jnp.exp(h - m)                           # EUP
    denom = jnp.sum(e, axis=0, keepdims=True)    # (1, TB)
    o_ref[...] = e / denom                       # exact division (rows sum to 1)


def _pack_params(params):
    """Pack the 8 weight/bias arrays into one (32, 16) f32 slab."""
    w1, b1, w2, b2, w3, b3, w4, b4 = params
    slab = jnp.zeros(_SLAB_SHAPE, jnp.float32)
    slab = slab.at[0:10, 0:5].set(w1).at[0:10, 5:6].set(b1)
    slab = slab.at[10:15, 0:10].set(w2).at[10:15, 10:11].set(b2)
    slab = slab.at[15:20, 0:5].set(w3).at[15:20, 5:6].set(b3)
    slab = slab.at[20:25, 0:5].set(w4).at[20:25, 5:6].set(b4)
    return slab


def _choose_tiling(B, max_tile_b):
    """tile_b = round_up(ceil(B / n_steps), 128); even n_steps for megacore."""
    max_tile = max(_LANE, (int(max_tile_b) // _LANE) * _LANE)
    min_split = 16 * 1024                # only split across 2 TCs if >=16K lanes each
    b_pad_min = pl.cdiv(B, _LANE) * _LANE
    n_steps = max(1, pl.cdiv(b_pad_min, max_tile))
    if n_steps == 1 and b_pad_min >= 2 * min_split:
        n_steps = 2                      # feed both TensorCores on v7x
    if n_steps > 1 and n_steps % 2:
        n_steps += 1
    tile_b = pl.cdiv(pl.cdiv(B, n_steps), _LANE) * _LANE
    tile_b = max(_LANE, min(tile_b, max_tile))
    grid_b = pl.cdiv(B, tile_b)
    return tile_b, grid_b


@functools.partial(jax.jit, static_argnames=("max_tile_b",))
def network2_forward(x, params, *, max_tile_b=65536):
    """Eval-mode forward of Network2.  x: (B, 5) f32 -> (B, 5) f32."""
    B = x.shape[0]
    tile_b, grid_b = _choose_tiling(B, max_tile_b)
    b_pad = grid_b * tile_b

    # Lane-dense layout: batch on lanes, features on sublanes.  Under jit the
    # cast + transpose + pad fuse into a single XLA copy on each side.
    x_t = jnp.pad(x.T.astype(jnp.float32), ((0, 0), (0, b_pad - B)))  # (5, b_pad)
    slab = _pack_params(params)                                        # (32, 16)

    in_specs = [
        pl.BlockSpec((_IN, tile_b), lambda i: (0, i)),
        # Full-array block, constant index_map -> stays VMEM-resident.
        pl.BlockSpec(_SLAB_SHAPE, lambda i: (0, 0)),
    ]
    out_specs = pl.BlockSpec((_OUT, tile_b), lambda i: (0, i))

    flops_per_col = 2 * (5 * 10 + 10 * 5 + 5 * 5 + 5 * 5) + 25 + 20
    cost = pl.CostEstimate(
        flops=flops_per_col * b_pad,
        transcendentals=_OUT * b_pad,
        bytes_accessed=(_IN + _OUT) * 4 * b_pad + 4 * _SLAB_SHAPE[0] * _SLAB_SHAPE[1],
    )

    out_t = pl.pallas_call(
        _mlp_kernel,
        out_shape=jax.ShapeDtypeStruct((_OUT, b_pad), jnp.float32),
        grid_spec=pltpu.PrefetchScalarGridSpec(
            num_scalar_prefetch=0,
            grid=(grid_b,),
            in_specs=in_specs,
            out_specs=out_specs,
        ),
        compiler_params=pltpu.CompilerParams(
            dimension_semantics=("parallel",),       # shard batch grid over TCs (v7x)
            vmem_limit_bytes=48 * 1024 * 1024,       # headroom below v7x's 64 MiB
        ),
        cost_estimate=cost,
    )(x_t, slab)

    return out_t[:, :B].T


def init_params(key):
    """Deterministic parameter init (PyTorch-Linear-style uniform ranges).

    Weights use PyTorch layout (out_features, in_features); biases (out, 1).
    """
    dims = [(5, 10), (10, 5), (5, 5), (5, 5)]  # (fan_in, fan_out)
    params = []
    for fan_in, fan_out in dims:
        key, kw, kb = jax.random.split(key, 3)
        bound = 1.0 / (fan_in ** 0.5)
        w = jax.random.uniform(kw, (fan_out, fan_in), jnp.float32, -bound, bound)
        b = jax.random.uniform(kb, (fan_out, 1), jnp.float32, -bound, bound)
        params.extend([w, b])
    return tuple(params)


def _reference_forward(x, params):
    """Plain-JAX reference (identical math, standard softmax)."""
    w1, b1, w2, b2, w3, b3, w4, b4 = params
    h = jnp.maximum(x @ w1.T + b1.T, 0.0)
    h = jnp.maximum(h @ w2.T + b2.T, 0.0)
    h = jnp.maximum(h @ w3.T + b3.T, 0.0)
    h = jnp.maximum(h @ w4.T + b4.T, 0.0)
    return jax.nn.softmax(h, axis=1)


if __name__ == "__main__":
    key = jax.random.PRNGKey(0)
    params = init_params(key)

    for B in (8, 300):   # small demo batch + a non-multiple-of-128 batch
        key, kx = jax.random.split(key)
        x = jax.random.normal(kx, (B, 5), dtype=jnp.float32)

        out = jax.block_until_ready(network2_forward(x, params))
        ref = _reference_forward(x, params)

        assert out.shape == (B, 5)
        assert jnp.allclose(out, ref, atol=1e-5, rtol=1e-5)
        assert jnp.allclose(jnp.sum(out, axis=1), jnp.ones((B,)), atol=1e-5)

    # TODO(synk): training branch (MSELoss vs target) is not implemented; only
    # the eval-mode forward (self.training == False) is covered.
    print("KERNEL_OK")
</pallas_src>

<mosaic_0001>
module attributes {stable_mosaic.version = 11 : i64} {
  func.func @_mlp_kernel(%arg0: i32, %arg1: memref<5x128xf32, #tpu.memory_space<vmem>>, %arg2: memref<32x16xf32, #tpu.memory_space<vmem>>, %arg3: memref<5x128xf32, #tpu.memory_space<vmem>>) attributes {dimension_semantics = [#tpu.dimension_semantics<parallel>], iteration_bounds = array<i64: 1>, scalar_prefetch = 0 : i64, scratch_operands = 0 : i64, tpu.core_type = #tpu.core_type<tc>, window_params = [{transform_indices = @transform_0, window_bounds = array<i64: 5, 128>}, {pipeline_mode = #tpu.pipeline_mode<synchronous>, transform_indices = @transform_1, window_bounds = array<i64: 32, 16>}, {transform_indices = @transform_2, window_bounds = array<i64: 5, 128>}]} {
    %c0 = arith.constant 0 : index
    %c0_0 = arith.constant 0 : index
    %0 = vector.load %arg2[%c0, %c0_0] : memref<32x16xf32, #tpu.memory_space<vmem>>, vector<32x16xf32>
    %c0_1 = arith.constant 0 : index
    %c0_2 = arith.constant 0 : index
    %1 = vector.load %arg1[%c0_1, %c0_2] : memref<5x128xf32, #tpu.memory_space<vmem>>, vector<5x128xf32>
    %2 = vector.extract_strided_slice %0 {offsets = [0, 0], sizes = [10, 5], strides = [1, 1]} : vector<32x16xf32> to vector<10x5xf32>
    %3 = vector.extract_strided_slice %0 {offsets = [0, 5], sizes = [10, 1], strides = [1, 1]} : vector<32x16xf32> to vector<10x1xf32>
    %4 = vector.extract_strided_slice %2 {offsets = [0, 0], sizes = [10, 1], strides = [1, 1]} : vector<10x5xf32> to vector<10x1xf32>
    %5 = vector.extract_strided_slice %1 {offsets = [0, 0], sizes = [1, 128], strides = [1, 1]} : vector<5x128xf32> to vector<1x128xf32>
    %6 = vector.broadcast %4 : vector<10x1xf32> to vector<10x128xf32>
    %7 = vector.broadcast %5 : vector<1x128xf32> to vector<10x128xf32>
    %8 = arith.mulf %6, %7 : vector<10x128xf32>
    %9 = vector.broadcast %3 : vector<10x1xf32> to vector<10x128xf32>
    %10 = arith.addf %8, %9 : vector<10x128xf32>
    %11 = vector.extract_strided_slice %2 {offsets = [0, 1], sizes = [10, 1], strides = [1, 1]} : vector<10x5xf32> to vector<10x1xf32>
    %12 = vector.extract_strided_slice %1 {offsets = [1, 0], sizes = [1, 128], strides = [1, 1]} : vector<5x128xf32> to vector<1x128xf32>
    %13 = vector.broadcast %11 : vector<10x1xf32> to vector<10x128xf32>
    %14 = vector.broadcast %12 : vector<1x128xf32> to vector<10x128xf32>
    %15 = arith.mulf %13, %14 : vector<10x128xf32>
    %16 = arith.addf %10, %15 : vector<10x128xf32>
    %17 = vector.extract_strided_slice %2 {offsets = [0, 2], sizes = [10, 1], strides = [1, 1]} : vector<10x5xf32> to vector<10x1xf32>
    %18 = vector.extract_strided_slice %1 {offsets = [2, 0], sizes = [1, 128], strides = [1, 1]} : vector<5x128xf32> to vector<1x128xf32>
    %19 = vector.broadcast %17 : vector<10x1xf32> to vector<10x128xf32>
    %20 = vector.broadcast %18 : vector<1x128xf32> to vector<10x128xf32>
    %21 = arith.mulf %19, %20 : vector<10x128xf32>
    %22 = arith.addf %16, %21 : vector<10x128xf32>
    %23 = vector.extract_strided_slice %2 {offsets = [0, 3], sizes = [10, 1], strides = [1, 1]} : vector<10x5xf32> to vector<10x1xf32>
    %24 = vector.extract_strided_slice %1 {offsets = [3, 0], sizes = [1, 128], strides = [1, 1]} : vector<5x128xf32> to vector<1x128xf32>
    %25 = vector.broadcast %23 : vector<10x1xf32> to vector<10x128xf32>
    %26 = vector.broadcast %24 : vector<1x128xf32> to vector<10x128xf32>
    %27 = arith.mulf %25, %26 : vector<10x128xf32>
    %28 = arith.addf %22, %27 : vector<10x128xf32>
    %29 = vector.extract_strided_slice %2 {offsets = [0, 4], sizes = [10, 1], strides = [1, 1]} : vector<10x5xf32> to vector<10x1xf32>
    %30 = vector.extract_strided_slice %1 {offsets = [4, 0], sizes = [1, 128], strides = [1, 1]} : vector<5x128xf32> to vector<1x128xf32>
    %31 = vector.broadcast %29 : vector<10x1xf32> to vector<10x128xf32>
    %32 = vector.broadcast %30 : vector<1x128xf32> to vector<10x128xf32>
    %33 = arith.mulf %31, %32 : vector<10x128xf32>
    %34 = arith.addf %28, %33 : vector<10x128xf32>
    %cst = arith.constant 0.000000e+00 : f32
    %35 = vector.broadcast %cst : f32 to vector<10x128xf32>
    %36 = arith.maximumf %34, %35 : vector<10x128xf32>
    %37 = vector.extract_strided_slice %0 {offsets = [10, 0], sizes = [5, 10], strides = [1, 1]} : vector<32x16xf32> to vector<5x10xf32>
    %38 = vector.extract_strided_slice %0 {offsets = [10, 10], sizes = [5, 1], strides = [1, 1]} : vector<32x16xf32> to vector<5x1xf32>
    %39 = vector.extract_strided_slice %37 {offsets = [0, 0], sizes = [5, 1], strides = [1, 1]} : vector<5x10xf32> to vector<5x1xf32>
    %40 = vector.extract_strided_slice %36 {offsets = [0, 0], sizes = [1, 128], strides = [1, 1]} : vector<10x128xf32> to vector<1x128xf32>
    %41 = vector.broadcast %39 : vector<5x1xf32> to vector<5x128xf32>
    %42 = vector.broadcast %40 : vector<1x128xf32> to vector<5x128xf32>
    %43 = arith.mulf %41, %42 : vector<5x128xf32>
    %44 = vector.broadcast %38 : vector<5x1xf32> to vector<5x128xf32>
    %45 = arith.addf %43, %44 : vector<5x128xf32>
    %46 = vector.extract_strided_slice %37 {offsets = [0, 1], sizes = [5, 1], strides = [1, 1]} : vector<5x10xf32> to vector<5x1xf32>
    %47 = vector.extract_strided_slice %36 {offsets = [1, 0], sizes = [1, 128], strides = [1, 1]} : vector<10x128xf32> to vector<1x128xf32>
    %48 = vector.broadcast %46 : vector<5x1xf32> to vector<5x128xf32>
    %49 = vector.broadcast %47 : vector<1x128xf32> to vector<5x128xf32>
    %50 = arith.mulf %48, %49 : vector<5x128xf32>
    %51 = arith.addf %45, %50 : vector<5x128xf32>
    %52 = vector.extract_strided_slice %37 {offsets = [0, 2], sizes = [5, 1], strides = [1, 1]} : vector<5x10xf32> to vector<5x1xf32>
    %53 = vector.extract_strided_slice %36 {offsets = [2, 0], sizes = [1, 128], strides = [1, 1]} : vector<10x128xf32> to vector<1x128xf32>
    %54 = vector.broadcast %52 : vector<5x1xf32> to vector<5x128xf32>
    %55 = vector.broadcast %53 : vector<1x128xf32> to vector<5x128xf32>
    %56 = arith.mulf %54, %55 : vector<5x128xf32>
    %57 = arith.addf %51, %56 : vector<5x128xf32>
    %58 = vector.extract_strided_slice %37 {offsets = [0, 3], sizes = [5, 1], strides = [1, 1]} : vector<5x10xf32> to vector<5x1xf32>
    %59 = vector.extract_strided_slice %36 {offsets = [3, 0], sizes = [1, 128], strides = [1, 1]} : vector<10x128xf32> to vector<1x128xf32>
    %60 = vector.broadcast %58 : vector<5x1xf32> to vector<5x128xf32>
    %61 = vector.broadcast %59 : vector<1x128xf32> to vector<5x128xf32>
    %62 = arith.mulf %60, %61 : vector<5x128xf32>
    %63 = arith.addf %57, %62 : vector<5x128xf32>
    %64 = vector.extract_strided_slice %37 {offsets = [0, 4], sizes = [5, 1], strides = [1, 1]} : vector<5x10xf32> to vector<5x1xf32>
    %65 = vector.extract_strided_slice %36 {offsets = [4, 0], sizes = [1, 128], strides = [1, 1]} : vector<10x128xf32> to vector<1x128xf32>
    %66 = vector.broadcast %64 : vector<5x1xf32> to vector<5x128xf32>
    %67 = vector.broadcast %65 : vector<1x128xf32> to vector<5x128xf32>
    %68 = arith.mulf %66, %67 : vector<5x128xf32>
    %69 = arith.addf %63, %68 : vector<5x128xf32>
    %70 = vector.extract_strided_slice %37 {offsets = [0, 5], sizes = [5, 1], strides = [1, 1]} : vector<5x10xf32> to vector<5x1xf32>
    %71 = vector.extract_strided_slice %36 {offsets = [5, 0], sizes = [1, 128], strides = [1, 1]} : vector<10x128xf32> to vector<1x128xf32>
    %72 = vector.broadcast %70 : vector<5x1xf32> to vector<5x128xf32>
    %73 = vector.broadcast %71 : vector<1x128xf32> to vector<5x128xf32>
    %74 = arith.mulf %72, %73 : vector<5x128xf32>
    %75 = arith.addf %69, %74 : vector<5x128xf32>
    %76 = vector.extract_strided_slice %37 {offsets = [0, 6], sizes = [5, 1], strides = [1, 1]} : vector<5x10xf32> to vector<5x1xf32>
    %77 = vector.extract_strided_slice %36 {offsets = [6, 0], sizes = [1, 128], strides = [1, 1]} : vector<10x128xf32> to vector<1x128xf32>
    %78 = vector.broadcast %76 : vector<5x1xf32> to vector<5x128xf32>
    %79 = vector.broadcast %77 : vector<1x128xf32> to vector<5x128xf32>
    %80 = arith.mulf %78, %79 : vector<5x128xf32>
    %81 = arith.addf %75, %80 : vector<5x128xf32>
    %82 = vector.extract_strided_slice %37 {offsets = [0, 7], sizes = [5, 1], strides = [1, 1]} : vector<5x10xf32> to vector<5x1xf32>
    %83 = vector.extract_strided_slice %36 {offsets = [7, 0], sizes = [1, 128], strides = [1, 1]} : vector<10x128xf32> to vector<1x128xf32>
    %84 = vector.broadcast %82 : vector<5x1xf32> to vector<5x128xf32>
    %85 = vector.broadcast %83 : vector<1x128xf32> to vector<5x128xf32>
    %86 = arith.mulf %84, %85 : vector<5x128xf32>
    %87 = arith.addf %81, %86 : vector<5x128xf32>
    %88 = vector.extract_strided_slice %37 {offsets = [0, 8], sizes = [5, 1], strides = [1, 1]} : vector<5x10xf32> to vector<5x1xf32>
    %89 = vector.extract_strided_slice %36 {offsets = [8, 0], sizes = [1, 128], strides = [1, 1]} : vector<10x128xf32> to vector<1x128xf32>
    %90 = vector.broadcast %88 : vector<5x1xf32> to vector<5x128xf32>
    %91 = vector.broadcast %89 : vector<1x128xf32> to vector<5x128xf32>
    %92 = arith.mulf %90, %91 : vector<5x128xf32>
    %93 = arith.addf %87, %92 : vector<5x128xf32>
    %94 = vector.extract_strided_slice %37 {offsets = [0, 9], sizes = [5, 1], strides = [1, 1]} : vector<5x10xf32> to vector<5x1xf32>
    %95 = vector.extract_strided_slice %36 {offsets = [9, 0], sizes = [1, 128], strides = [1, 1]} : vector<10x128xf32> to vector<1x128xf32>
    %96 = vector.broadcast %94 : vector<5x1xf32> to vector<5x128xf32>
    %97 = vector.broadcast %95 : vector<1x128xf32> to vector<5x128xf32>
    %98 = arith.mulf %96, %97 : vector<5x128xf32>
    %99 = arith.addf %93, %98 : vector<5x128xf32>
    %cst_3 = arith.constant 0.000000e+00 : f32
    %100 = vector.broadcast %cst_3 : f32 to vector<5x128xf32>
    %101 = arith.maximumf %99, %100 : vector<5x128xf32>
    %102 = vector.extract_strided_slice %0 {offsets = [15, 0], sizes = [5, 5], strides = [1, 1]} : vector<32x16xf32> to vector<5x5xf32>
    %103 = vector.extract_strided_slice %0 {offsets = [15, 5], sizes = [5, 1], strides = [1, 1]} : vector<32x16xf32> to vector<5x1xf32>
    %104 = vector.extract_strided_slice %102 {offsets = [0, 0], sizes = [5, 1], strides = [1, 1]} : vector<5x5xf32> to vector<5x1xf32>
    %105 = vector.extract_strided_slice %101 {offsets = [0, 0], sizes = [1, 128], strides = [1, 1]} : vector<5x128xf32> to vector<1x128xf32>
    %106 = vector.broadcast %104 : vector<5x1xf32> to vector<5x128xf32>
    %107 = vector.broadcast %105 : vector<1x128xf32> to vector<5x128xf32>
    %108 = arith.mulf %106, %107 : vector<5x128xf32>
    %109 = vector.broadcast %103 : vector<5x1xf32> to vector<5x128xf32>
    %110 = arith.addf %108, %109 : vector<5x128xf32>
    %111 = vector.extract_strided_slice %102 {offsets = [0, 1], sizes = [5, 1], strides = [1, 1]} : vector<5x5xf32> to vector<5x1xf32>
    %112 = vector.extract_strided_slice %101 {offsets = [1, 0], sizes = [1, 128], strides = [1, 1]} : vector<5x128xf32> to vector<1x128xf32>
    %113 = vector.broadcast %111 : vector<5x1xf32> to vector<5x128xf32>
    %114 = vector.broadcast %112 : vector<1x128xf32> to vector<5x128xf32>
    %115 = arith.mulf %113, %114 : vector<5x128xf32>
    %116 = arith.addf %110, %115 : vector<5x128xf32>
    %117 = vector.extract_strided_slice %102 {offsets = [0, 2], sizes = [5, 1], strides = [1, 1]} : vector<5x5xf32> to vector<5x1xf32>
    %118 = vector.extract_strided_slice %101 {offsets = [2, 0], sizes = [1, 128], strides = [1, 1]} : vector<5x128xf32> to vector<1x128xf32>
    %119 = vector.broadcast %117 : vector<5x1xf32> to vector<5x128xf32>
    %120 = vector.broadcast %118 : vector<1x128xf32> to vector<5x128xf32>
    %121 = arith.mulf %119, %120 : vector<5x128xf32>
    %122 = arith.addf %116, %121 : vector<5x128xf32>
    %123 = vector.extract_strided_slice %102 {offsets = [0, 3], sizes = [5, 1], strides = [1, 1]} : vector<5x5xf32> to vector<5x1xf32>
    %124 = vector.extract_strided_slice %101 {offsets = [3, 0], sizes = [1, 128], strides = [1, 1]} : vector<5x128xf32> to vector<1x128xf32>
    %125 = vector.broadcast %123 : vector<5x1xf32> to vector<5x128xf32>
    %126 = vector.broadcast %124 : vector<1x128xf32> to vector<5x128xf32>
    %127 = arith.mulf %125, %126 : vector<5x128xf32>
    %128 = arith.addf %122, %127 : vector<5x128xf32>
    %129 = vector.extract_strided_slice %102 {offsets = [0, 4], sizes = [5, 1], strides = [1, 1]} : vector<5x5xf32> to vector<5x1xf32>
    %130 = vector.extract_strided_slice %101 {offsets = [4, 0], sizes = [1, 128], strides = [1, 1]} : vector<5x128xf32> to vector<1x128xf32>
    %131 = vector.broadcast %129 : vector<5x1xf32> to vector<5x128xf32>
    %132 = vector.broadcast %130 : vector<1x128xf32> to vector<5x128xf32>
    %133 = arith.mulf %131, %132 : vector<5x128xf32>
    %134 = arith.addf %128, %133 : vector<5x128xf32>
    %cst_4 = arith.constant 0.000000e+00 : f32
    %135 = vector.broadcast %cst_4 : f32 to vector<5x128xf32>
    %136 = arith.maximumf %134, %135 : vector<5x128xf32>
    %137 = vector.extract_strided_slice %0 {offsets = [20, 0], sizes = [5, 5], strides = [1, 1]} : vector<32x16xf32> to vector<5x5xf32>
    %138 = vector.extract_strided_slice %0 {offsets = [20, 5], sizes = [5, 1], strides = [1, 1]} : vector<32x16xf32> to vector<5x1xf32>
    %139 = vector.extract_strided_slice %137 {offsets = [0, 0], sizes = [5, 1], strides = [1, 1]} : vector<5x5xf32> to vector<5x1xf32>
    %140 = vector.extract_strided_slice %136 {offsets = [0, 0], sizes = [1, 128], strides = [1, 1]} : vector<5x128xf32> to vector<1x128xf32>
    %141 = vector.broadcast %139 : vector<5x1xf32> to vector<5x128xf32>
    %142 = vector.broadcast %140 : vector<1x128xf32> to vector<5x128xf32>
    %143 = arith.mulf %141, %142 : vector<5x128xf32>
    %144 = vector.broadcast %138 : vector<5x1xf32> to vector<5x128xf32>
    %145 = arith.addf %143, %144 : vector<5x128xf32>
    %146 = vector.extract_strided_slice %137 {offsets = [0, 1], sizes = [5, 1], strides = [1, 1]} : vector<5x5xf32> to vector<5x1xf32>
    %147 = vector.extract_strided_slice %136 {offsets = [1, 0], sizes = [1, 128], strides = [1, 1]} : vector<5x128xf32> to vector<1x128xf32>
    %148 = vector.broadcast %146 : vector<5x1xf32> to vector<5x128xf32>
    %149 = vector.broadcast %147 : vector<1x128xf32> to vector<5x128xf32>
    %150 = arith.mulf %148, %149 : vector<5x128xf32>
    %151 = arith.addf %145, %150 : vector<5x128xf32>
    %152 = vector.extract_strided_slice %137 {offsets = [0, 2], sizes = [5, 1], strides = [1, 1]} : vector<5x5xf32> to vector<5x1xf32>
    %153 = vector.extract_strided_slice %136 {offsets = [2, 0], sizes = [1, 128], strides = [1, 1]} : vector<5x128xf32> to vector<1x128xf32>
    %154 = vector.broadcast %152 : vector<5x1xf32> to vector<5x128xf32>
    %155 = vector.broadcast %153 : vector<1x128xf32> to vector<5x128xf32>
    %156 = arith.mulf %154, %155 : vector<5x128xf32>
    %157 = arith.addf %151, %156 : vector<5x128xf32>
    %158 = vector.extract_strided_slice %137 {offsets = [0, 3], sizes = [5, 1], strides = [1, 1]} : vector<5x5xf32> to vector<5x1xf32>
    %159 = vector.extract_strided_slice %136 {offsets = [3, 0], sizes = [1, 128], strides = [1, 1]} : vector<5x128xf32> to vector<1x128xf32>
    %160 = vector.broadcast %158 : vector<5x1xf32> to vector<5x128xf32>
    %161 = vector.broadcast %159 : vector<1x128xf32> to vector<5x128xf32>
    %162 = arith.mulf %160, %161 : vector<5x128xf32>
    %163 = arith.addf %157, %162 : vector<5x128xf32>
    %164 = vector.extract_strided_slice %137 {offsets = [0, 4], sizes = [5, 1], strides = [1, 1]} : vector<5x5xf32> to vector<5x1xf32>
    %165 = vector.extract_strided_slice %136 {offsets = [4, 0], sizes = [1, 128], strides = [1, 1]} : vector<5x128xf32> to vector<1x128xf32>
    %166 = vector.broadcast %164 : vector<5x1xf32> to vector<5x128xf32>
    %167 = vector.broadcast %165 : vector<1x128xf32> to vector<5x128xf32>
    %168 = arith.mulf %166, %167 : vector<5x128xf32>
    %169 = arith.addf %163, %168 : vector<5x128xf32>
    %cst_5 = arith.constant 0.000000e+00 : f32
    %170 = vector.broadcast %cst_5 : f32 to vector<5x128xf32>
    %171 = arith.maximumf %169, %170 : vector<5x128xf32>
    %cst_6 = arith.constant dense<0xFF800000> : vector<128xf32>
    %172 = vector.multi_reduction <maximumf>, %171, %cst_6 [0] : vector<5x128xf32> to vector<128xf32>
    %173 = vector.shape_cast %172 : vector<128xf32> to vector<1x128xf32>
    %174 = vector.broadcast %173 : vector<1x128xf32> to vector<5x128xf32>
    %175 = arith.subf %171, %174 : vector<5x128xf32>
    %176 = math.exp %175 : vector<5x128xf32>
    %cst_7 = arith.constant dense<0.000000e+00> : vector<128xf32>
    %177 = vector.multi_reduction <add>, %176, %cst_7 [0] : vector<5x128xf32> to vector<128xf32>
    %178 = vector.shape_cast %177 : vector<128xf32> to vector<1x128xf32>
    %179 = vector.broadcast %178 : vector<1x128xf32> to vector<5x128xf32>
    %180 = arith.divf %176, %179 : vector<5x128xf32>
    %c0_8 = arith.constant 0 : index
    %c0_9 = arith.constant 0 : index
    %181 = vector.load %arg3[%c0_8, %c0_9] : memref<5x128xf32, #tpu.memory_space<vmem>>, vector<5x128xf32>
    tpu.vector_store %arg3[%c0_8, %c0_9], %180 {strides = array<i32>} : memref<5x128xf32, #tpu.memory_space<vmem>>, vector<5x128xf32>,
    return
  }
  func.func @transform_0(%arg0: i32) -> (i32, i32) {
    %c0_i32 = arith.constant 0 : i32
    %c0_i32_0 = arith.constant 0 : i32
    return %c0_i32, %arg0 : i32, i32
  }
  func.func @transform_1(%arg0: i32) -> (i32, i32) {
    %c0_i32 = arith.constant 0 : i32
    %c0_i32_0 = arith.constant 0 : i32
    %c0_i32_1 = arith.constant 0 : i32
    return %c0_i32, %c0_i32_0 : i32, i32
  }
  func.func @transform_2(%arg0: i32) -> (i32, i32) {
    %c0_i32 = arith.constant 0 : i32
    %c0_i32_0 = arith.constant 0 : i32
    return %c0_i32, %arg0 : i32, i32
  }
}

</mosaic_0001>

<bundles_post_ra>
// kernel: network2_forward.1
= control target key start
LH: loop header
LB: loop body
LE: loop exit
PB: predicated region body
PF: predicated region fallthrough
CT: control target
= control target key end

     0   :  { %v348_v0 = vmov 1   ;;  %v349_v1 = vmov 0   ;;  %v350_v3 = vmov 3   ;;  %v351_v4 = vmov 2   ;;  %s413_s1 = inlined_call_operand.vmem [shape: f32[32,16], index: 1, kind: input, shape index: {}]   ;;  %s414_s0 = inlined_call_operand.vmem [shape: f32[5,128], index: 0, kind: input, shape index: {}]   ;;  %s415_s2 = inlined_call_operand.vmem [shape: f32[5,128], index: 2, kind: output, shape index: {}]  }
   0x1   :  { %315 = vset.pattern.permute.xlu1 %v348_v0  ;;  %313 = vset.pattern.permute.xlu0 %v349_v1  ;;  %v11_v2 = vld [vmem:[%s413_s1] sm:$0xff]  ;;  %v352_v5 = vmov 5   ;;  %v353_v6 = vmov 4   ;;  %v12_v7 = vld [vmem:[%s413_s1 + $0x8] sm:$0xff]  ;;  %v354_v8 = vmov 10   ;;  %v355_v9 = vmov 6  }
   0x2   :  { %40 = vperm.xlu1 %315, %v11_v2   ;;  %18 = vperm.xlu0 %313, %v11_v2   ;;  %v13_v10 = vld [vmem:[%s413_s1 + $0x10] sm:$0xff]  ;;  %v14_v11 = vld [vmem:[%s413_s1 + $0x18] sm:$0xff]  ;;  %v356_v12 = vmov 7   ;;  %v357_v13 = vmov 8   ;;  %v358_v14 = vmov 9   ;;  %vm248_vm0 = vcmask 1047556  }
   0x3   :  { %317 = vset.pattern.permute.xlu2 %v350_v3  ;;  %v15_v18 = vld [vmem:[%s414_s0] sm:$0x1f]  ;;  %vm250_vm1 = vcmask 1040384   ;;  %vm267_vm2 = vcmask 1043456   ;;  %vm272_vm3 = vcmask 1044480  }
   0x4   :  { %66 = vperm.xlu2 %317, %v11_v2   ;;  %v26_v19 = vperm.slane %v15_v18, 0  ;;  %v47_v21 = vperm.slane %v15_v18, 1  ;;  %v60_v23 = vperm.slane %v15_v18, 2  ;;  %v73_v26 = vperm.slane %v15_v18, 3 }
   0x5   :  { %v86_v29 = vperm.slane %v15_v18, 4 }
   0xa   :  { %316 = vset.pattern.permute.xlu1 %v351_v4  ;;  %314 = vset.pattern.permute.xlu0 %v352_v5 }
   0xb   :  { %53 = vperm.xlu1 %316, %v11_v2   ;;  %30 = vperm.xlu0 %314, %v11_v2  }
   0xc   :  { %318 = vset.pattern.permute.xlu2 %v353_v6 }
   0xd   :  { %79 = vperm.xlu2 %318, %v11_v2  }
  0x13   :  { %319 = vset.pattern.permute.xlu1 %v349_v1  ;;  %321 = vset.pattern.permute.xlu0 %v348_v0 }
  0x14   :  { %23 = vperm.xlu1 %319, %v12_v7   ;;  %44 = vperm.xlu0 %321, %v12_v7  }
  0x15   :  { %320 = vset.pattern.permute.xlu2 %v352_v5 }
  0x16   :  { %34 = vperm.xlu2 %320, %v12_v7  }
  0x1c   :  { %322 = vset.pattern.permute.xlu1 %v354_v8  ;;  %326 = vset.pattern.permute.xlu0 %v355_v9 }
  0x1d   :  { %96 = vperm.xlu1 %322, %v12_v7   ;;  %116 = vperm.xlu0 %326, %v12_v7  }
  0x1e   :  { %323 = vset.pattern.permute.xlu2 %v351_v4 }
  0x1f   :  { %57 = vperm.xlu2 %323, %v12_v7  }
  0x25   :  { %324 = vset.pattern.permute.xlu1 %v350_v3  ;;  %331 = vset.pattern.permute.xlu0 %v352_v5 }
  0x26   :  { %70 = vperm.xlu1 %324, %v12_v7   ;;  %153 = vperm.xlu0 %331, %v13_v10  }
  0x27   :  { %325 = vset.pattern.permute.xlu2 %v353_v6 }
  0x28   :  { %83 = vperm.xlu2 %325, %v12_v7  }
  0x2e   :  { %327 = vset.pattern.permute.xlu1 %v356_v12  ;;  %336 = vset.pattern.permute.xlu0 %v349_v1 }
  0x2f   :  { %123 = vperm.xlu1 %327, %v12_v7   ;;  %198 = vperm.xlu0 %336, %v14_v11  }
  0x30   :  { %328 = vset.pattern.permute.xlu2 %v357_v13 }
  0x31   :  { %130 = vperm.xlu2 %328, %v12_v7  }
  0x37   :  { %329 = vset.pattern.permute.xlu1 %v358_v14  ;;  %341 = vset.pattern.permute.xlu0 %v353_v6 }
  0x38   :  { %137 = vperm.xlu1 %329, %v12_v7   ;;  %238 = vperm.xlu0 %341, %v14_v11  }
  0x39   :  { %330 = vset.pattern.permute.xlu2 %v349_v1 }
  0x3a   :  { %146 = vperm.xlu2 %330, %v13_v10  }
  0x40   :  { %332 = vset.pattern.permute.xlu1 %v348_v0 }
  0x41   :  { %159 = vperm.xlu1 %332, %v13_v10  }
  0x42   :  { %333 = vset.pattern.permute.xlu2 %v351_v4 }
  0x43   :  { %168 = vperm.xlu2 %333, %v13_v10  }
  0x49   :  { %334 = vset.pattern.permute.xlu1 %v350_v3 }
  0x4a   :  { %177 = vperm.xlu1 %334, %v13_v10  }
  0x4b   :  { %335 = vset.pattern.permute.xlu2 %v353_v6 }
  0x4c   :  { %186 = vperm.xlu2 %335, %v13_v10  }
  0x52   :  { %337 = vset.pattern.permute.xlu1 %v352_v5 }
  0x53   :  { %205 = vperm.xlu1 %337, %v14_v11  }
  0x54   :  { %338 = vset.pattern.permute.xlu2 %v348_v0 }
  0x55   :  { %211 = vperm.xlu2 %338, %v14_v11  }
  0x5b   :  { %339 = vset.pattern.permute.xlu1 %v351_v4 }
  0x5c   :  { %220 = vperm.xlu1 %339, %v14_v11  }
  0x5d   :  { %340 = vset.pattern.permute.xlu2 %v350_v3 }
  0x5e   :  { %229 = vperm.xlu2 %340, %v14_v11   ;;  %v67_v15 = vpop.permute.xlu2 %66 }
  0x5f   :  { %v74_v32 = vmul.f32 %v73_v26, %v67_v15 }
  0x67   :  { %v80_v20 = vpop.permute.xlu2 %79 }
  0x68   :  { %v87_v35 = vmul.f32 %v86_v29, %v80_v20 }
  0x70   :  { %v397_v33 = vpop.permute.xlu2 %34 }
  0x74   :  { %v41_v16 = vpop.permute.xlu1 %40  ;;  %v19_v17 = vpop.permute.xlu0 %18 }
  0x75   :  { %v27_v22 = vmul.f32 %v26_v19, %v19_v17  ;;  %v48_v27 = vmul.f32 %v47_v21, %v41_v16 }
  0x79   :  { %v399_v41 = vpop.permute.xlu2 %57 }
  0x7a   :  { %v62_v52 = vmul.f32 %v60_v23, %v399_v41 }
  0x7d   :  { %v54_v24 = vpop.permute.xlu1 %53  ;;  %v31_v25 = vpop.permute.xlu0 %30 }
  0x7e   :  { %v37_v28 = vadd.f32 %v31_v25, %v27_v22  ;;  %v61_v30 = vmul.f32 %v60_v23, %v54_v24 }
  0x80   :  { %v50_v31 = vadd.f32 %v48_v27, %v37_v28 }
  0x82   :  { %v63_v34 = vadd.f32 %v61_v30, %v50_v31  ;;  %v84_v55 = vpop.permute.xlu2 %83 }
  0x83   :  { %v88_v59 = vmul.f32 %v86_v29, %v84_v55 }
  0x84   :  { %v76_v36 = vadd.f32 %v74_v32, %v63_v34 }
  0x86   :  { %v89_v37 = vadd.f32 %v87_v35, %v76_v36  ;;  %v24_v38 = vpop.permute.xlu1 %23  ;;  %v45_v43 = vpop.permute.xlu0 %44 }
  0x87   :  { %v28_v42 = vmul.f32 %v26_v19, %v24_v38  ;;  %v49_v48 = vmul.f32 %v47_v21, %v45_v43 }
  0x88   :  { %v91_v39 = vmax.f32 %v89_v37, 0.0 }
  0x89   :  { %v38_v47 = vadd.f32 %v397_v33, %v28_v42 }
  0x8a   :  { %v93_v40 = vperm.slane %v91_v39, 0  ;;  %v100_v44 = vperm.slane %v91_v39, 1  ;;  %v103_v50 = vperm.slane %v91_v39, 2  ;;  %v109_v57 = vperm.slane %v91_v39, 4 }
  0x8b   :  { %v51_v53 = vadd.f32 %v49_v48, %v38_v47  ;;  %v106_v58 = vperm.slane %v91_v39, 3  ;;  %v112_v61 = vperm.slane %v91_v39, 5  ;;  %v131_v9 = vpop.permute.xlu2 %130  ;;  %v119_v10 = vperm.slane %v91_v39, 6 }
  0x8c   :  { %v94_v46 = vmul.f32 %v93_v40, %v24_v38  ;;  %v101_v51 = vmul.f32 %v100_v44, %v45_v43  ;;  %v104_v56 = vmul.f32 %v103_v50, %v399_v41  ;;  %v110_v2 = vmul.f32 %v109_v57, %v84_v55 }
  0x8d   :  { %v64_v63 = vadd.f32 %v62_v52, %v51_v53  ;;  %v113_v7 = vmul.f32 %v112_v61, %v397_v33  ;;  %v126_v15 = vperm.slane %v91_v39, 7 }
  0x8f   :  { %v97_v45 = vpop.permute.xlu1 %96  ;;  %v117_v8 = vpop.permute.xlu0 %116 }
  0x90   :  { %v99_v49 = vadd.f32 %v97_v45, %v94_v46  ;;  %v120_v13 = vmul.f32 %v119_v10, %v117_v8 }
  0x92   :  { %v102_v54 = vadd.f32 %v101_v51, %v99_v49 }
  0x94   :  { %v105_v62 = vadd.f32 %v104_v56, %v102_v54  ;;  %v147_v21 = vpop.permute.xlu2 %146 }
  0x98   :  { %v71_v60 = vpop.permute.xlu1 %70  ;;  %v154_v32 = vpop.permute.xlu0 %153 }
  0x99   :  { %v75_v0 = vmul.f32 %v73_v26, %v71_v60  ;;  %v107_v1 = vmul.f32 %v106_v58, %v71_v60 }
  0x9b   :  { %v77_v3 = vadd.f32 %v75_v0, %v64_v63  ;;  %v108_v4 = vadd.f32 %v107_v1, %v105_v62 }
  0x9d   :  { %v111_v5 = vadd.f32 %v110_v2, %v108_v4  ;;  %v90_v6 = vadd.f32 %v88_v59, %v77_v3  ;;  %v169_v30 = vpop.permute.xlu2 %168 }
  0x9f   :  { %v92_v11 = vmax.f32 %v90_v6, 0.0  ;;  %v114_v12 = vadd.f32 %v113_v7, %v111_v5 }
  0xa1   :  { %v124_v14 = vpop.permute.xlu1 %123  ;;  %v133_v16 = vperm.slane %v92_v11, 0  ;;  %v121_v17 = vadd.f32 %v120_v13, %v114_v12  ;;  %v140_v22 = vperm.slane %v92_v11, 1  ;;  %v199_v3 = vpop.permute.xlu0 %198 }
  0xa2   :  { %v127_v18 = vmul.f32 %v126_v15, %v124_v14 }
  0xa3   :  { %v134_v19 = vmul.f32 %v133_v16, %v131_v9 }
  0xa4   :  { %v128_v20 = vadd.f32 %v127_v18, %v121_v17 }
  0xa6   :  { %v135_v24 = vadd.f32 %v134_v19, %v128_v20  ;;  %v187_v54 = vpop.permute.xlu2 %186 }
  0xaa   :  { %v138_v23 = vpop.permute.xlu1 %137  ;;  %v239_v20 = vpop.permute.xlu0 %238 }
  0xab   :  { %v141_v25 = vmul.f32 %v140_v22, %v138_v23 }
  0xad   :  { %v142_v26 = vadd.f32 %v141_v25, %v135_v24 }
  0xaf   :  { %v143_v27 = vmax.f32 %v142_v26, 0.0  ;;  %v212_v1 = vpop.permute.xlu2 %211 }
  0xb1   :  { %v162_v28 = vperm.slane %v143_v27, 3  ;;  %v149_v29 = vperm.slane %v143_v27, 2  ;;  %v171_v35 = vperm.slane %v143_v27, 4  ;;  %v180_v42 = vperm.slane %v143_v27, 5 }
  0xb2   :  { %v189_v45 = vperm.slane %v143_v27, 6 }
  0xb3   :  { %v160_v31 = vpop.permute.xlu1 %159  ;;  %v150_v34 = vmul.f32 %v149_v29, %v24_v38  ;;  %v151_v36 = vmul.f32 %v149_v29, %v147_v21  ;;  %v163_v37 = vmul.f32 %v162_v28, %v45_v43  ;;  %v172_v47 = vmul.f32 %v171_v35, %v399_v41 }
  0xb4   :  { %v164_v39 = vmul.f32 %v162_v28, %v160_v31  ;;  %v181_v50 = vmul.f32 %v180_v42, %v71_v60  ;;  %v190_v51 = vmul.f32 %v189_v45, %v84_v55  ;;  %v173_v53 = vmul.f32 %v171_v35, %v169_v30 }
  0xb5   :  { %v156_v40 = vadd.f32 %v150_v34, %v397_v33  ;;  %v157_v44 = vadd.f32 %v154_v32, %v151_v36  ;;  %v191_v58 = vmul.f32 %v189_v45, %v187_v54 }
  0xb7   :  { %v165_v46 = vadd.f32 %v163_v37, %v156_v40  ;;  %v166_v48 = vadd.f32 %v164_v39, %v157_v44 }
  0xb8   :  { %v230_v15 = vpop.permute.xlu2 %229 }
  0xb9   :  { %v174_v49 = vadd.f32 %v172_v47, %v165_v46  ;;  %v175_v57 = vadd.f32 %v173_v53, %v166_v48 }
  0xbb   :  { %v183_v52 = vadd.f32 %v181_v50, %v174_v49 }
  0xbc   :  { %v178_v38 = vpop.permute.xlu1 %177 }
  0xbd   :  { %v192_v56 = vadd.f32 %v190_v51, %v183_v52  ;;  %v182_v43 = vmul.f32 %v180_v42, %v178_v38 }
  0xbf   :  { %v194_v59 = vmax.f32 %v192_v56, 0.0  ;;  %v184_v33 = vadd.f32 %v182_v43, %v175_v57 }
  0xc1   :  { %v201_v61 = vperm.slane %v194_v59, 7  ;;  %v193_v62 = vadd.f32 %v191_v58, %v184_v33 }
  0xc3   :  { %v202_v63 = vmul.f32 %v201_v61, %v147_v21  ;;  %v195_v0 = vmax.f32 %v193_v62, 0.0  ;;  %v203_v6 = vmul.f32 %v201_v61, %v199_v3 }
  0xc5   :  { %v214_v41 = vperm.slane %v195_v0, 0  ;;  %v206_v2 = vpop.permute.xlu1 %205  ;;  %v223_v60 = vperm.slane %v195_v0, 1  ;;  %v208_v55 = vadd.f32 %v202_v63, %v154_v32  ;;  %v232_v4 = vperm.slane %v195_v0, 2 }
  0xc6   :  { %v241_v9 = vperm.slane %v195_v0, 3  ;;  %v209_v12 = vadd.f32 %v206_v2, %v203_v6 }
  0xc7   :  { %v215_v5 = vmul.f32 %v214_v41, %v160_v31  ;;  %v224_v8 = vmul.f32 %v223_v60, %v169_v30  ;;  %v233_v10 = vmul.f32 %v232_v4, %v178_v38  ;;  %v216_v11 = vmul.f32 %v214_v41, %v212_v1 }
  0xc8   :  { %v242_v18 = vmul.f32 %v241_v9, %v187_v54  ;;  %v234_v21 = vmul.f32 %v232_v4, %v230_v15  ;;  %v243_v24 = vmul.f32 %v241_v9, %v239_v20 }
  0xc9   :  { %v217_v7 = vadd.f32 %v215_v5, %v208_v55  ;;  %v218_v17 = vadd.f32 %v216_v11, %v209_v12 }
  0xcb   :  { %v226_v13 = vadd.f32 %v224_v8, %v217_v7 }
  0xcd   :  { %v235_v14 = vadd.f32 %v233_v10, %v226_v13 }
  0xce   :  { %v221_v16 = vpop.permute.xlu1 %220 }
  0xcf   :  { %v225_v19 = vmul.f32 %v223_v60, %v221_v16  ;;  %v244_v23 = vadd.f32 %v242_v18, %v235_v14 }
  0xd1   :  { %v227_v22 = vadd.f32 %v225_v19, %v218_v17  ;;  %v246_v27 = vmax.f32 %v244_v23, 0.0 }
  0xd3   :  { %v236_v25 = vadd.f32 %v234_v21, %v227_v22  ;;  %v249_v29 = vsel %vm248_vm0, %v246_v27, -inf }
  0xd5   :  { %v245_v26 = vadd.f32 %v243_v24, %v236_v25 }
  0xd7   :  { %v247_v28 = vmax.f32 %v245_v26, 0.0 }
  0xd9   :  { %v251_v30 = vsel %vm250_vm1, %v247_v28, -inf }
  0xda   :  { %v252_v31 = vmax.f32 %v249_v29, %v251_v30 }
  0xdc   :  { %v253_v32 = vrot.slane %v252_v31, 4 }
  0xde   :  { %v254_v34 = vmax.f32 %v252_v31, %v253_v32 }
  0xe0   :  { %v255_v35 = vrot.slane %v254_v34, 2 }
  0xe2   :  { %v256_v36 = vmax.f32 %v254_v34, %v255_v35 }
  0xe4   :  { %v257_v37 = vrot.slane %v256_v36, 1 }
  0xe6   :  { %v258_v39 = vmax.f32 %v256_v36, %v257_v37 }
  0xe8   :  { %v259_v40 = vsub.f32 %v246_v27, %v258_v39  ;;  %v260_v42 = vsub.f32 %v247_v28, %v258_v39 }
  0xea   :  { %v261_v44 = vmul.f32 1.442695, %v259_v40  ;;  %v263_v45 = vmul.f32 1.442695, %v260_v42 }
  0xec   :  { %342 = vpow2.f32 %v261_v44 }
  0xed   :  { %344 = vpow2.f32 %v263_v45 }
  0xf2   :  { %v343_v46 = vpop.eup %342 }
  0xf3   :  { %v345_v47 = vpop.eup %344  ;;  %v268_v48 = vrot.slane %v343_v46, 4 }
  0xf4   :  { %v269_v49 = vrot.slane %v345_v47, 4 }
  0xf6   :  { %v270_v50 = vsel %vm267_vm2, %v268_v48, %v269_v49 }
  0xf7   :  { %v273_v51 = vsel %vm272_vm3, %v270_v50, 0.0 }
  0xf8   :  { %v274_v52 = vrot.slane %v273_v51, 4 }
  0xfa   :  { %v275_v53 = vadd.f32 %v274_v52, %v273_v51 }
  0xfc   :  { %v276_v54 = vrot.slane %v275_v53, 2 }
  0xfe   :  { %v277_v38 = vadd.f32 %v276_v54, %v275_v53 }
 0x100   :  { %v278_v56 = vrot.slane %v277_v38, 1 }
 0x102   :  { %v279_v57 = vadd.f32 %v278_v56, %v277_v38 }
 0x104   :  { %346 = vrcp.f32 %v279_v57  ;;  %v291_v33 = vand.u32 2147483648, %v279_v57  ;;  %v289_v62 = vand.u32 2147483647, %v279_v57  ;;  %vm285_vm5 = vweird.f32 %v279_v57 }
 0x106   :  { %v292_v0 = vor.u32 1.1754944e-38, %v291_v33  ;;  %vm290_vm7 = vcmp.eq.f32.partialorder %v289_v62, 8.507059e+37 }
 0x10a   :  { %v347_v43 = vpop.eup %346 }
 0x10b   :  { %v281_v58 = vmul.f32 %v347_v43, %v279_v57  ;;  %vm286_vm4 = vweird.f32 %v347_v43 }
 0x10c   :  { %vm287_vm6 = vmor %vm285_vm5, %vm286_vm4 }
 0x10d   :  { %v282_v59 = vsub.f32 1.0, %v281_v58 }
 0x10f   :  { %v283_v61 = vmul.f32 %v347_v43, %v282_v59 }
 0x111   :  { %v284_v63 = vadd.f32 %v347_v43, %v283_v61 }
 0x113   :  { %v288_v1 = vsel %vm287_vm6, %v347_v43, %v284_v63 }
 0x114   :  { %v293_v41 = vsel %vm290_vm7, %v292_v0, %v288_v1 }
 0x115   :  { %v294_v2 = vmul.f32 %v343_v46, %v293_v41  ;;  %v295_v3 = vmul.f32 %v345_v47, %v293_v41 }
 0x117   :  { %296 = vst [vmem:[%s415_s2 - $0x4] sm:$0xf0] %v294_v2 }
 0x118   :  { %297 = vst [vmem:[%s415_s2 + $0x4] sm:$0x1] %v295_v3 }

</bundles_post_ra>
